<compile_context>
chip_gen: v7x
topology: tpu7x:2x2x1
jax: 0.10.0
libtpu: 0.0.40
codegen_flags: <defaults>
</compile_context>

<pallas_src>
import functools

import jax
import jax.numpy as jnp
from jax import lax
from jax.experimental import pallas as pl
from jax.experimental.pallas import tpu as pltpu

LEAK = 0.2
_C = (1, 1, 2, 4)  # conv channel progression, fixed by the module


def _leaky(x):
    return jnp.where(x > 0, x, LEAK * x)


# ---------------------------------------------------------------------------
# pltpu.roll direction probe (runs once, eagerly, cached).  The conv taps are
# encoded as lane rotations of the flat activation; this pins the rotate
# direction convention to jnp.roll semantics regardless of backend version.
# ---------------------------------------------------------------------------
_ROLL_MATCHES_JNP = None


def _roll_matches_jnp():
    global _ROLL_MATCHES_JNP
    if _ROLL_MATCHES_JNP is None:
        def k(x_ref, o_ref):
            o_ref[...] = pltpu.roll(x_ref[...], 1, 1)

        x = jnp.broadcast_to(jnp.arange(128, dtype=jnp.float32), (8, 128))
        y = pl.pallas_call(
            k,
            out_shape=jax.ShapeDtypeStruct((8, 128), jnp.float32),
            in_specs=[pl.BlockSpec(memory_space=pltpu.MemorySpace.VMEM)],
            out_specs=pl.BlockSpec(memory_space=pltpu.MemorySpace.VMEM),
        )(x)
        # jnp.roll semantics: out[i] = in[i - shift]  ->  out[:, 1] == 0.
        _ROLL_MATCHES_JNP = bool(y[0, 1] == 0.0)
    return _ROLL_MATCHES_JNP


# ---------------------------------------------------------------------------
# Fused kernel
# ---------------------------------------------------------------------------
def _make_fused_kernel(shifts, N):
    c0, c1, c2, c3 = _C

    def conv_layer(act, wmat_ref, b_ref, mask_ref, sh_ref, c_in, c_out):
        # act: (c_in, N).  Build the im2col slab (27*c_in, N) with XLU lane
        # rolls + boundary masks, then one MXU matmul per layer.
        for t, shift in enumerate(shifts):
            rolled = act if shift == 0 else pltpu.roll(act, shift, 1)
            sh_ref[t * c_in:(t + 1) * c_in, :] = rolled * mask_ref[t:t + 1, :]
        out = jnp.dot(wmat_ref[...], sh_ref[0:27 * c_in, :],
                      preferred_element_type=jnp.float32)          # (8, N)
        return _leaky(out[0:c_out, :] + b_ref[...])                 # (c_out, N)

    def kernel(x_ref, w0_ref, b0_ref, mask_ref,
               wc1_ref, bc1_ref, wc2_ref, bc2_ref, wc3_ref, bc3_ref,
               wch_ref, bch_ref, w1_ref, b1_ref, w2_ref, b2_ref,
               o_ref, sh_ref):
        # fc0: contraction over vocab on the VPU, output already lane-dense.
        act = _leaky(
            jnp.sum(x_ref[0] * w0_ref[...], axis=0, keepdims=True)
            + b0_ref[...])                                          # (1, N)
        # conv1..conv3 (+ leaky).  Dropout == identity (eval mode).
        act = conv_layer(act, wc1_ref, bc1_ref, mask_ref, sh_ref, c0, c1)
        act = conv_layer(act, wc2_ref, bc2_ref, mask_ref, sh_ref, c1, c2)
        act = conv_layer(act, wc3_ref, bc3_ref, mask_ref, sh_ref, c2, c3)
        # head: linear_ch -> fc1 -> leaky -> fc2 -> sigmoid.
        y = jnp.dot(wch_ref[...], act, preferred_element_type=jnp.float32)  # (8, N)
        y = y + bch_ref[...]                      # row 0 is the real result
        z = jnp.dot(y, w1_ref[...], preferred_element_type=jnp.float32)     # (8, 8)
        z = _leaky(z[0:1, :] + b1_ref[...])                          # (1, latent)
        logit = jnp.sum(z * w2_ref[...], axis=1, keepdims=True) + b2_ref[...]
        o_ref[...] = jnp.broadcast_to(
            jax.nn.sigmoid(logit).reshape(1, 1, 1), (1, 1, 128))

    return kernel


@functools.partial(jax.jit, static_argnums=(2,))
def _forward_impl(x, p, roll_fwd):
    B, S, V, vocab = x.shape
    D = p["w0"].shape[1]
    N = S * V * D                      # flat spatial size (lane axis), 256 here
    latent = p["w1"].shape[1]
    c0, c1, c2, c3 = _C

    # ---- flat-layout helpers (d-major: p = d*S*V + s*V + v) ---------------
    d_ix = jnp.arange(D).reshape(D, 1, 1)
    s_ix = jnp.arange(S).reshape(1, S, 1)
    v_ix = jnp.arange(V).reshape(1, 1, V)

    masks, deltas = [], []
    for ds_ in (-1, 0, 1):             # kd: seq axis
        for dv in (-1, 0, 1):          # kh: voice axis
            for dd in (-1, 0, 1):      # kw: d_model axis
                ok = ((s_ix + ds_ >= 0) & (s_ix + ds_ < S) &
                      (v_ix + dv >= 0) & (v_ix + dv < V) &
                      (d_ix + dd >= 0) & (d_ix + dd < D))
                masks.append(jnp.broadcast_to(ok, (D, S, V)).reshape(N))
                deltas.append(dd * (S * V) + ds_ * V + dv)
    mask = jnp.stack(masks).astype(jnp.float32)                     # (27, N)
    shifts = [((-dlt) % N) if roll_fwd else (dlt % N) for dlt in deltas]

    # ---- inputs / weights re-laid-out for the lane-dense flat layout ------
    rep_d = jnp.repeat(jnp.arange(D), S * V)        # d index of each flat pos
    xt = x.reshape(B, S * V, vocab).transpose(0, 2, 1)      # (B, vocab, S*V)
    x_exp = jnp.broadcast_to(
        xt[:, :, None, :], (B, vocab, D, S * V)).reshape(B, vocab, N)
    w0_flat = p["w0"][:, rep_d]                                     # (vocab, N)
    b0_flat = p["b0"][rep_d].reshape(1, N)

    def conv_mat(w):       # (c_out, c_in, 3,3,3) -> (8, 27*c_in), zero-padded
        c_out, c_in = w.shape[:2]
        m = w.transpose(0, 2, 3, 4, 1).reshape(c_out, 27 * c_in)
        return jnp.concatenate(
            [m, jnp.zeros((8 - c_out, 27 * c_in), m.dtype)], axis=0)

    def bias_slab(b):
        return jnp.broadcast_to(b.reshape(-1, 1), (b.shape[0], N))

    wc1, bc1 = conv_mat(p["w_c1"]), bias_slab(p["b_c1"])
    wc2, bc2 = conv_mat(p["w_c2"]), bias_slab(p["b_c2"])
    wc3, bc3 = conv_mat(p["w_c3"]), bias_slab(p["b_c3"])

    wch = jnp.concatenate(
        [p["w_ch"].reshape(1, c3), jnp.zeros((7, c3), jnp.float32)], axis=0)
    bch = jnp.broadcast_to(p["b_ch"].reshape(1, 1), (1, N))

    # fc1 rows permuted from torch flat order (s,v,d) to our (d,s,v) order.
    f_of_p = jnp.broadcast_to(
        s_ix * (V * D) + v_ix * D + d_ix, (D, S, V)).reshape(N)
    w1p = p["w1"][f_of_p, :]                                        # (N, latent)
    b1 = p["b1"].reshape(1, latent)
    w2t = p["w2"].reshape(1, latent)
    b2 = p["b2"].reshape(1, 1)

    kernel = _make_fused_kernel(shifts, N)
    full2 = lambda b: (0, 0)
    out = pl.pallas_call(
        kernel,
        out_shape=jax.ShapeDtypeStruct((B, 1, 128), jnp.float32),
        grid=(B,),
        in_specs=[
            pl.BlockSpec((1, vocab, N), lambda b: (b, 0, 0)),
            pl.BlockSpec((vocab, N), full2),
            pl.BlockSpec((1, N), full2),
            pl.BlockSpec((27, N), full2),
            pl.BlockSpec((8, 27 * c0), full2),
            pl.BlockSpec((c1, N), full2),
            pl.BlockSpec((8, 27 * c1), full2),
            pl.BlockSpec((c2, N), full2),
            pl.BlockSpec((8, 27 * c2), full2),
            pl.BlockSpec((c3, N), full2),
            pl.BlockSpec((8, c3), full2),
            pl.BlockSpec((1, N), full2),
            pl.BlockSpec((N, latent), full2),
            pl.BlockSpec((1, latent), full2),
            pl.BlockSpec((1, latent), full2),
            pl.BlockSpec((1, 1), full2),
        ],
        out_specs=pl.BlockSpec((1, 1, 128), lambda b: (b, 0, 0)),
        scratch_shapes=[pltpu.VMEM((27 * c2, N), jnp.float32)],   # im2col slab
        compiler_params=pltpu.CompilerParams(
            dimension_semantics=("parallel",)),
    )(x_exp, w0_flat, b0_flat, mask, wc1, bc1, wc2, bc2, wc3, bc3,
      wch, bch, w1p, b1, w2t, b2)
    return out[:, 0, :1]                                            # (B, 1)


def discriminator_forward(x, params):
    return _forward_impl(x, params, _roll_matches_jnp())


# ---------------------------------------------------------------------------
# Deterministic parameter init (PyTorch-style uniform(-1/sqrt(fan_in), ...))
# ---------------------------------------------------------------------------
def init_params(key, vocab_size, seq_length, voices):
    d_model, latent = 8, 8
    c = [1, 1, 2, 4]
    ks = jax.random.split(key, 14)

    def u(k, shape, fan_in):
        bound = 1.0 / (fan_in ** 0.5)
        return jax.random.uniform(k, shape, jnp.float32, -bound, bound)

    m_in = seq_length * voices * d_model
    return dict(
        w0=u(ks[0], (vocab_size, d_model), vocab_size),
        b0=u(ks[1], (d_model,), vocab_size),
        w_c1=u(ks[2], (c[1], c[0], 3, 3, 3), c[0] * 27),
        b_c1=u(ks[3], (c[1],), c[0] * 27),
        w_c2=u(ks[4], (c[2], c[1], 3, 3, 3), c[1] * 27),
        b_c2=u(ks[5], (c[2],), c[1] * 27),
        w_c3=u(ks[6], (c[3], c[2], 3, 3, 3), c[2] * 27),
        b_c3=u(ks[7], (c[3],), c[2] * 27),
        w_ch=u(ks[8], (c[3],), c[3]),
        b_ch=u(ks[9], (1,), c[3]),
        w1=u(ks[10], (m_in, latent), m_in),
        b1=u(ks[11], (latent,), m_in),
        w2=u(ks[12], (latent, 1), latent),
        b2=u(ks[13], (1,), latent),
    )


# ---------------------------------------------------------------------------
# Pure-JAX reference (for correctness check)
# ---------------------------------------------------------------------------
def reference_forward(x, p):
    B = x.shape[0]
    h = _leaky(jnp.einsum("bsvk,kd->bsvd", x, p["w0"]) + p["b0"])[:, None]

    def conv(h, w, b):
        o = lax.conv_general_dilated(
            h, w, (1, 1, 1), ((1, 1), (1, 1), (1, 1)),
            dimension_numbers=("NCDHW", "OIDHW", "NCDHW"))
        return _leaky(o + b.reshape(1, -1, 1, 1, 1))

    h = conv(h, p["w_c1"], p["b_c1"])
    h = conv(h, p["w_c2"], p["b_c2"])
    h = conv(h, p["w_c3"], p["b_c3"])
    h = jnp.transpose(h, (0, 2, 3, 4, 1))                  # (B, S, V, D, C3)
    h = h @ p["w_ch"].reshape(-1, 1) + p["b_ch"]           # linear_ch
    h = h.reshape(B, -1)
    h = _leaky(h @ p["w1"] + p["b1"])
    return jax.nn.sigmoid(h @ p["w2"] + p["b2"])


if __name__ == "__main__":
    vocab_size, seq_length, voices, batch = 16, 8, 4, 2
    x = jax.random.normal(jax.random.PRNGKey(0),
                          (batch, seq_length, voices, vocab_size), jnp.float32)
    params = init_params(jax.random.PRNGKey(1), vocab_size, seq_length, voices)

    out = discriminator_forward(x, params)
    out = jax.block_until_ready(out)

    ref = reference_forward(x, params)
    assert out.shape == (batch, 1), out.shape
    if not jnp.allclose(out, ref, atol=1e-4, rtol=1e-4):
        raise AssertionError(f"mismatch:\n{out}\nvs\n{ref}")
    print("KERNEL_OK")
</pallas_src>

<mosaic_0001>
module attributes {stable_mosaic.version = 11 : i64} {
  func.func @k(%arg0: memref<8x128xf32, #tpu.memory_space<vmem>>, %arg1: memref<8x128xf32, #tpu.memory_space<vmem>>) attributes {dimension_semantics = [], scalar_prefetch = 0 : i64, scratch_operands = 0 : i64, tpu.core_type = #tpu.core_type<tc>} {
    %c0 = arith.constant 0 : index
    %c0_0 = arith.constant 0 : index
    %0 = vector.load %arg0[%c0, %c0_0] : memref<8x128xf32, #tpu.memory_space<vmem>>, vector<8x128xf32>
    %c1_i32 = arith.constant 1 : i32
    %1 = tpu.dynamic_rotate %0 by %c1_i32 dim 1 : vector<8x128xf32>, i32 -> vector<8x128xf32>
    %c0_1 = arith.constant 0 : index
    %c0_2 = arith.constant 0 : index
    %2 = vector.load %arg1[%c0_1, %c0_2] : memref<8x128xf32, #tpu.memory_space<vmem>>, vector<8x128xf32>
    tpu.vector_store %arg1[%c0_1, %c0_2], %1 {strides = array<i32>} : memref<8x128xf32, #tpu.memory_space<vmem>>, vector<8x128xf32>,
    return
  }
}

</mosaic_0001>

<bundles_post_ra>
// kernel: tpu_custom_call.1
= control target key start
LH: loop header
LB: loop body
LE: loop exit
PB: predicated region body
PF: predicated region fallthrough
CT: control target
= control target key end

     0   :  { %6 = vsyncpa [#allocation3], 0  ;;  %s128_s0 = inlined_call_operand.hbm [shape: f32[8,128], index: 0, kind: input, shape index: {}]   ;;  %s129_s1 = inlined_call_operand.hbm [shape: f32[8,128], index: 1, kind: output, shape index: {}]  }
   0x1   :  { %7 = vsyncpa [#allocation4], 0  ;;  %s91_s6 = smov [#allocation2]   ;;  %s43_s10 = scalar_lea.hbm %s128_s0, 128 }
   0x2   :  { %s14_s7 = sshll.u32 %s91_s6, 4  ;;  %p44_p0 = scmp.ne.s32.totalorder %s128_s0, %s43_s10  ;;  %s15_s7 = int_to_ptr.vmem [resolvable:$true] %s14_s7 }
   0x3   :  { %p47_p1 = scmp.lt.u32.totalorder %s43_s10, %s128_s0 }
   0x5   :  { %p49_p2 = pnand %p47_p1, %p44_p0 }
   0x7   :  { %52 = shalt.err (!%p49_p2)
}
   0x8   :  { %s53_s15 = scalar_lea.vmem %s15_s7, 128  ;;  %p58_p4 = scmp.lt.s32.totalorder %s15_s7, %s15_s7 }
   0x9   :  { %p54_p3 = scmp.ne.s32.totalorder %s15_s7, %s53_s15  ;;  %p59_p5 = scmp.lt.s32.totalorder %s53_s15, %s53_s15 }
   0xb   :  { %p60_p6 = por %p59_p5, %p58_p4 }
   0xd   :  { %p61_p7 = pnand %p60_p6, %p54_p3 }
   0xf   :  { %64 = shalt.err (!%p61_p7)
}
  0x10   :  { %17 = dma.hbm_to_vmem [thread:$0]  %s128_s0, 128, %s15_s7, [#allocation3]  }
  0x11   :  { %87 = dma.done.wait [#allocation3], 128  }
  0x12   :  { %88 = vsyncadd [#allocation3], 4294967168  ;;  %v21_v0 = vld [vmem:[#allocation2] sm:$0xff]  ;;  %s92_s18 = smov 1   ;;  %s93_s19 = smov [#allocation5]  }
  0x13   :  { %22 = vrot.lane.b32.xlu0 %v21_v0, %s92_s18  ;;  %s31_s20 = sshll.u32 %s93_s19, 4  ;;  %s32_s20 = int_to_ptr.vmem [resolvable:$true] %s31_s20 }
  0x14   :  { %s65_s21 = scalar_lea.vmem %s32_s20, 128  ;;  %p70_p9 = scmp.lt.s32.totalorder %s32_s20, %s32_s20 }
  0x15   :  { %p66_p8 = scmp.ne.s32.totalorder %s32_s20, %s65_s21  ;;  %p71_p10 = scmp.lt.s32.totalorder %s65_s21, %s65_s21 }
  0x17   :  { %p72_p11 = por %p71_p10, %p70_p9 }
  0x19   :  { %p73_p12 = pnand %p72_p11, %p66_p8 }
  0x85   :  { %v23_v1 = vpop.permute.xlu0 %22 }
  0x86   :  { %24 = vst [vmem:[#allocation5] sm:$0xff] %v23_v1 }
  0x87   :  { %76 = shalt.err (!%p73_p12)
}
  0x88   :  { %s77_s0 = scalar_lea.hbm %s129_s1, 128 }
  0x89   :  { %p78_p13 = scmp.ne.s32.totalorder %s129_s1, %s77_s0  ;;  %p81_p0 = scmp.lt.u32.totalorder %s77_s0, %s129_s1 }
  0x8b   :  { %p83_p1 = pnand %p81_p0, %p78_p13 }
  0x8d   :  { %86 = shalt.err (!%p83_p1)
}
  0x8e   :  { %34 = dma.vmem_to_hbm [thread:$0]  %s32_s20, 128, %s129_s1, [#allocation4]  }
  0x8f   :  { %89 = dma.done.wait [#allocation4], 128  }
  0x90   :  { %90 = vsyncadd [#allocation4], 4294967168 }
  0x91   :  { %38 = vsyncpa [#allocation3], 1 }
  0x92   :  { %39 = vsyncpa [#allocation4], 1 }

</bundles_post_ra>
